<compile_context>
chip_gen: v7x
topology: tpu7x:2x2x1
jax: 0.10.0
libtpu: 0.0.40
codegen_flags: <defaults>
</compile_context>

<pallas_src>
import functools

import jax
import jax.numpy as jnp
from jax.experimental import pallas as pl
from jax.experimental.pallas import tpu as pltpu


def _dice_partial_kernel(x_ref, y_ref, o_ref, inter_acc, xsum_acc, ysum_acc,
                         *, l_total, lane_tile, n_lane_tiles, lane_ragged):
    k = pl.program_id(1)

    @pl.when(k == 0)
    def _init():
        inter_acc[...] = jnp.zeros_like(inter_acc)
        xsum_acc[...] = jnp.zeros_like(xsum_acc)
        ysum_acc[...] = jnp.zeros_like(ysum_acc)

    nchunks = lane_tile // 128

    def _fold(v):
        # Fold a (row_tile, lane_tile) tile into a 128-lane-wide partial sum
        # using static, 128-aligned lane slices (VPU adds only; the single
        # cross-lane reduce is deferred to the wrapper).
        acc = v[:, 0:128]
        for j in range(1, nchunks):
            acc = acc + v[:, j * 128:(j + 1) * 128]
        return acc

    def _accumulate(masked):
        x = x_ref[...].astype(jnp.float32)
        y = y_ref[...].astype(jnp.float32)
        if masked:
            # Ragged last lane tile: zero every lane past the true length L.
            # (The only tile that can over-read HBM padding/garbage.)
            start = k * lane_tile
            lane = jax.lax.broadcasted_iota(jnp.int32, x.shape, dimension=1)
            valid = lane < (l_total - start)
            x = jnp.where(valid, x, 0.0)
            y = jnp.where(valid, y, 0.0)
        inter_acc[...] += _fold(x * y)
        xsum_acc[...] += _fold(x)
        ysum_acc[...] += _fold(y)

    if lane_ragged:
        @pl.when(k == n_lane_tiles - 1)
        def _masked_tail():
            _accumulate(masked=True)

        @pl.when(k < n_lane_tiles - 1)
        def _interior():
            _accumulate(masked=False)
    else:
        _accumulate(masked=False)

    @pl.when(k == n_lane_tiles - 1)
    def _finalize():
        # Lane-dense 128-wide stores (no sub-128 masked vst in the epilogue).
        o_ref[0, :, :] = inter_acc[...]
        o_ref[1, :, :] = xsum_acc[...]
        o_ref[2, :, :] = ysum_acc[...]


def dice_micro(inp, target, *, num_classes=1, smooth=1e-6):
    """Pallas implementation of Dice(average='micro').forward(input, target)."""
    b = inp.shape[0]
    x2 = jnp.reshape(inp, (b * num_classes, -1))      # keep original dtype
    y2 = jnp.reshape(target, (b * num_classes, -1))   # keep original dtype
    bc, l = x2.shape
    assert y2.shape == (bc, l), (x2.shape, y2.shape)

    isx = jnp.dtype(x2.dtype).itemsize
    isy = jnp.dtype(y2.dtype).itemsize

    # Generation-aware VMEM budgets (64 MiB/TC on v7x, 128 MiB on v5e/v6e).
    try:
        vmem_cap = int(pltpu.get_tpu_info().vmem_capacity_bytes)
    except Exception:
        vmem_cap = 64 * 1024 * 1024  # conservative fallback
    if vmem_cap <= 64 * 1024 * 1024:
        input_budget = 16 * 1024 * 1024   # 2 bufs x 2 inputs x block
        vmem_limit = 48 * 1024 * 1024
    else:
        input_budget = 32 * 1024 * 1024
        vmem_limit = 96 * 1024 * 1024

    # Row (sublane) blocking: keeps blocks inside the budget for large bc and
    # gives v7x a clean "parallel" axis to megacore-shard.
    min_item = min(isx, isy)
    row_align = {4: 8, 2: 16, 1: 32}.get(min_item, 8)
    row_cap = 512
    if bc <= row_cap:
        row_tile = bc                       # full-dim block: no (8,...) constraint
    else:
        row_tile = (row_cap // row_align) * row_align

    # Largest lane tile (multiple of 128, capped at 2048) whose double-buffered
    # input blocks fit the budget: big, lane-dense DMAs for the HBM roofline.
    l_round = ((l + 127) // 128) * 128
    max_lanes = (input_budget // (2 * row_tile * (isx + isy))) // 128 * 128
    lane_tile = max(128, min(2048, max_lanes, l_round))

    n_row_blocks = pl.cdiv(bc, row_tile)
    n_lane_tiles = pl.cdiv(l, lane_tile)
    lane_ragged = (n_lane_tiles * lane_tile) != l

    kernel = functools.partial(
        _dice_partial_kernel,
        l_total=l,
        lane_tile=lane_tile,
        n_lane_tiles=n_lane_tiles,
        lane_ragged=lane_ragged,
    )

    cost = pl.CostEstimate(
        flops=4 * bc * l,
        transcendentals=0,
        bytes_accessed=bc * l * (isx + isy) + 3 * bc * 128 * 4,
    )

    parts = pl.pallas_call(
        kernel,
        out_shape=jax.ShapeDtypeStruct((3, bc, 128), jnp.float32),
        grid_spec=pltpu.PrefetchScalarGridSpec(
            num_scalar_prefetch=0,
            grid=(n_row_blocks, n_lane_tiles),
            in_specs=[
                pl.BlockSpec((row_tile, lane_tile), lambda i, k: (i, k)),
                pl.BlockSpec((row_tile, lane_tile), lambda i, k: (i, k)),
            ],
            out_specs=pl.BlockSpec((3, row_tile, 128), lambda i, k: (0, i, 0)),
            scratch_shapes=[
                pltpu.VMEM((row_tile, 128), jnp.float32),
                pltpu.VMEM((row_tile, 128), jnp.float32),
                pltpu.VMEM((row_tile, 128), jnp.float32),
            ],
        ),
        compiler_params=pltpu.CompilerParams(
            dimension_semantics=("parallel", "arbitrary"),
            vmem_limit_bytes=vmem_limit,
        ),
        cost_estimate=cost,
    )(x2, y2)

    # Tiny final combine in plain JAX: one 128-lane reduce, dice per row, mean
    # over exactly bc rows (no padded rows ever enter the mean).
    totals = jnp.sum(parts, axis=-1)                   # (3, bc)
    inter, xsum, ysum = totals[0], totals[1], totals[2]
    dice = (2.0 * inter + smooth) / (xsum + ysum + smooth)
    return jnp.mean(dice)


def _dice_ref(inp, target, *, num_classes=1, smooth=1e-6):
    b = inp.shape[0]
    x = jnp.reshape(inp, (b, num_classes, -1)).astype(jnp.float32)
    y = jnp.reshape(target, (b, num_classes, -1)).astype(jnp.float32)
    inter = jnp.sum(x * y, axis=2)
    return jnp.mean(
        (2.0 * inter + smooth) / (jnp.sum(x, axis=2) + jnp.sum(y, axis=2) + smooth)
    )


if __name__ == "__main__":
    key = jax.random.PRNGKey(0)
    k1, k2, k3, k4 = jax.random.split(key, 4)

    # Case 1: NCHW inputs, batch=2, channels(=num_classes)=4, spatial=16x16.
    num_classes = 4
    x = jax.random.uniform(k1, (2, num_classes, 16, 16), dtype=jnp.float32)
    t = (jax.random.uniform(k2, (2, num_classes, 16, 16)) > 0.5).astype(jnp.float32)
    out = jax.block_until_ready(dice_micro(x, t, num_classes=num_classes))
    ref = _dice_ref(x, t, num_classes=num_classes)
    assert jnp.allclose(out, ref, rtol=1e-5, atol=1e-6), (out, ref)

    # Case 2: exercises multi-tile accumulation + ragged last lane tile
    # (L = 2304 > lane_tile = 2048, so the last tile is masked).
    x2 = jax.random.uniform(k3, (2, 2, 48, 48), dtype=jnp.float32)
    t2 = (jax.random.uniform(k4, (2, 2, 48, 48)) > 0.5).astype(jnp.float32)
    out2 = jax.block_until_ready(dice_micro(x2, t2, num_classes=2))
    ref2 = _dice_ref(x2, t2, num_classes=2)
    assert jnp.allclose(out2, ref2, rtol=1e-5, atol=1e-6), (out2, ref2)

    print("KERNEL_OK")
</pallas_src>

<mosaic_0001>
module attributes {stable_mosaic.version = 11 : i64} {
  func.func @_dice_partial_kernel(%arg0: i32, %arg1: i32, %arg2: memref<8x256xf32, #tpu.memory_space<vmem>>, %arg3: memref<8x256xf32, #tpu.memory_space<vmem>>, %arg4: memref<3x8x128xf32, #tpu.memory_space<vmem>>, %arg5: memref<8x128xf32, #tpu.memory_space<vmem>>, %arg6: memref<8x128xf32, #tpu.memory_space<vmem>>, %arg7: memref<8x128xf32, #tpu.memory_space<vmem>>) attributes {dimension_semantics = [#tpu.dimension_semantics<parallel>, #tpu.dimension_semantics<arbitrary>], iteration_bounds = array<i64: 1, 1>, scalar_prefetch = 0 : i64, scratch_operands = 3 : i64, tpu.core_type = #tpu.core_type<tc>, window_params = [{transform_indices = @transform_0, window_bounds = array<i64: 8, 256>}, {transform_indices = @transform_1, window_bounds = array<i64: 8, 256>}, {transform_indices = @transform_2, window_bounds = array<i64: 3, 8, 128>}]} {
    %c0_i32 = arith.constant 0 : i32
    %0 = arith.cmpi eq, %arg1, %c0_i32 : i32
    %1 = arith.extui %0 : i1 to i32
    %c0_i32_0 = arith.constant 0 : i32
    %2 = arith.cmpi ne, %1, %c0_i32_0 : i32
    scf.if %2 {
      %cst = arith.constant 0.000000e+00 : f32
      %27 = vector.broadcast %cst : f32 to vector<8x128xf32>
      %c0_18 = arith.constant 0 : index
      %c0_19 = arith.constant 0 : index
      %28 = vector.load %arg5[%c0_18, %c0_19] : memref<8x128xf32, #tpu.memory_space<vmem>>, vector<8x128xf32>
      tpu.vector_store %arg5[%c0_18, %c0_19], %27 {strides = array<i32>} : memref<8x128xf32, #tpu.memory_space<vmem>>, vector<8x128xf32>,
      %cst_20 = arith.constant 0.000000e+00 : f32
      %29 = vector.broadcast %cst_20 : f32 to vector<8x128xf32>
      %c0_21 = arith.constant 0 : index
      %c0_22 = arith.constant 0 : index
      %30 = vector.load %arg6[%c0_21, %c0_22] : memref<8x128xf32, #tpu.memory_space<vmem>>, vector<8x128xf32>
      tpu.vector_store %arg6[%c0_21, %c0_22], %29 {strides = array<i32>} : memref<8x128xf32, #tpu.memory_space<vmem>>, vector<8x128xf32>,
      %cst_23 = arith.constant 0.000000e+00 : f32
      %31 = vector.broadcast %cst_23 : f32 to vector<8x128xf32>
      %c0_24 = arith.constant 0 : index
      %c0_25 = arith.constant 0 : index
      %32 = vector.load %arg7[%c0_24, %c0_25] : memref<8x128xf32, #tpu.memory_space<vmem>>, vector<8x128xf32>
      tpu.vector_store %arg7[%c0_24, %c0_25], %31 {strides = array<i32>} : memref<8x128xf32, #tpu.memory_space<vmem>>, vector<8x128xf32>,
    } else {
    }
    %c0 = arith.constant 0 : index
    %c0_1 = arith.constant 0 : index
    %3 = vector.load %arg2[%c0, %c0_1] : memref<8x256xf32, #tpu.memory_space<vmem>>, vector<8x256xf32>
    %c0_2 = arith.constant 0 : index
    %c0_3 = arith.constant 0 : index
    %4 = vector.load %arg3[%c0_2, %c0_3] : memref<8x256xf32, #tpu.memory_space<vmem>>, vector<8x256xf32>
    %c0_4 = arith.constant 0 : index
    %c0_5 = arith.constant 0 : index
    %5 = vector.load %arg5[%c0_4, %c0_5] : memref<8x128xf32, #tpu.memory_space<vmem>>, vector<8x128xf32>
    %6 = arith.mulf %3, %4 : vector<8x256xf32>
    %7 = vector.extract_strided_slice %6 {offsets = [0, 0], sizes = [8, 128], strides = [1, 1]} : vector<8x256xf32> to vector<8x128xf32>
    %8 = vector.extract_strided_slice %6 {offsets = [0, 128], sizes = [8, 128], strides = [1, 1]} : vector<8x256xf32> to vector<8x128xf32>
    %9 = arith.addf %7, %8 : vector<8x128xf32>
    %10 = arith.addf %5, %9 : vector<8x128xf32>
    %c0_6 = arith.constant 0 : index
    %c0_7 = arith.constant 0 : index
    %11 = vector.load %arg5[%c0_6, %c0_7] : memref<8x128xf32, #tpu.memory_space<vmem>>, vector<8x128xf32>
    tpu.vector_store %arg5[%c0_6, %c0_7], %10 {strides = array<i32>} : memref<8x128xf32, #tpu.memory_space<vmem>>, vector<8x128xf32>,
    %c0_8 = arith.constant 0 : index
    %c0_9 = arith.constant 0 : index
    %12 = vector.load %arg6[%c0_8, %c0_9] : memref<8x128xf32, #tpu.memory_space<vmem>>, vector<8x128xf32>
    %13 = vector.extract_strided_slice %3 {offsets = [0, 0], sizes = [8, 128], strides = [1, 1]} : vector<8x256xf32> to vector<8x128xf32>
    %14 = vector.extract_strided_slice %3 {offsets = [0, 128], sizes = [8, 128], strides = [1, 1]} : vector<8x256xf32> to vector<8x128xf32>
    %15 = arith.addf %13, %14 : vector<8x128xf32>
    %16 = arith.addf %12, %15 : vector<8x128xf32>
    %c0_10 = arith.constant 0 : index
    %c0_11 = arith.constant 0 : index
    %17 = vector.load %arg6[%c0_10, %c0_11] : memref<8x128xf32, #tpu.memory_space<vmem>>, vector<8x128xf32>
    tpu.vector_store %arg6[%c0_10, %c0_11], %16 {strides = array<i32>} : memref<8x128xf32, #tpu.memory_space<vmem>>, vector<8x128xf32>,
    %c0_12 = arith.constant 0 : index
    %c0_13 = arith.constant 0 : index
    %18 = vector.load %arg7[%c0_12, %c0_13] : memref<8x128xf32, #tpu.memory_space<vmem>>, vector<8x128xf32>
    %19 = vector.extract_strided_slice %4 {offsets = [0, 0], sizes = [8, 128], strides = [1, 1]} : vector<8x256xf32> to vector<8x128xf32>
    %20 = vector.extract_strided_slice %4 {offsets = [0, 128], sizes = [8, 128], strides = [1, 1]} : vector<8x256xf32> to vector<8x128xf32>
    %21 = arith.addf %19, %20 : vector<8x128xf32>
    %22 = arith.addf %18, %21 : vector<8x128xf32>
    %c0_14 = arith.constant 0 : index
    %c0_15 = arith.constant 0 : index
    %23 = vector.load %arg7[%c0_14, %c0_15] : memref<8x128xf32, #tpu.memory_space<vmem>>, vector<8x128xf32>
    tpu.vector_store %arg7[%c0_14, %c0_15], %22 {strides = array<i32>} : memref<8x128xf32, #tpu.memory_space<vmem>>, vector<8x128xf32>,
    %c0_i32_16 = arith.constant 0 : i32
    %24 = arith.cmpi eq, %arg1, %c0_i32_16 : i32
    %25 = arith.extui %24 : i1 to i32
    %c0_i32_17 = arith.constant 0 : i32
    %26 = arith.cmpi ne, %25, %c0_i32_17 : i32
    scf.if %26 {
      %c0_18 = arith.constant 0 : index
      %c0_19 = arith.constant 0 : index
      %27 = vector.load %arg5[%c0_18, %c0_19] : memref<8x128xf32, #tpu.memory_space<vmem>>, vector<8x128xf32>
      %c0_20 = arith.constant 0 : index
      %c0_21 = arith.constant 0 : index
      %c0_22 = arith.constant 0 : index
      %28 = vector.load %arg4[%c0_20, %c0_21, %c0_22] : memref<3x8x128xf32, #tpu.memory_space<vmem>>, vector<1x8x128xf32>
      %29 = vector.shape_cast %28 : vector<1x8x128xf32> to vector<8x128xf32>
      %30 = vector.shape_cast %27 : vector<8x128xf32> to vector<1x8x128xf32>
      tpu.vector_store %arg4[%c0_20, %c0_21, %c0_22], %30 {strides = array<i32>} : memref<3x8x128xf32, #tpu.memory_space<vmem>>, vector<1x8x128xf32>,
      %c0_23 = arith.constant 0 : index
      %c0_24 = arith.constant 0 : index
      %31 = vector.load %arg6[%c0_23, %c0_24] : memref<8x128xf32, #tpu.memory_space<vmem>>, vector<8x128xf32>
      %c1 = arith.constant 1 : index
      %c0_25 = arith.constant 0 : index
      %c0_26 = arith.constant 0 : index
      %32 = vector.load %arg4[%c1, %c0_25, %c0_26] : memref<3x8x128xf32, #tpu.memory_space<vmem>>, vector<1x8x128xf32>
      %33 = vector.shape_cast %32 : vector<1x8x128xf32> to vector<8x128xf32>
      %34 = vector.shape_cast %31 : vector<8x128xf32> to vector<1x8x128xf32>
      tpu.vector_store %arg4[%c1, %c0_25, %c0_26], %34 {strides = array<i32>} : memref<3x8x128xf32, #tpu.memory_space<vmem>>, vector<1x8x128xf32>,
      %c0_27 = arith.constant 0 : index
      %c0_28 = arith.constant 0 : index
      %35 = vector.load %arg7[%c0_27, %c0_28] : memref<8x128xf32, #tpu.memory_space<vmem>>, vector<8x128xf32>
      %c2 = arith.constant 2 : index
      %c0_29 = arith.constant 0 : index
      %c0_30 = arith.constant 0 : index
      %36 = vector.load %arg4[%c2, %c0_29, %c0_30] : memref<3x8x128xf32, #tpu.memory_space<vmem>>, vector<1x8x128xf32>
      %37 = vector.shape_cast %36 : vector<1x8x128xf32> to vector<8x128xf32>
      %38 = vector.shape_cast %35 : vector<8x128xf32> to vector<1x8x128xf32>
      tpu.vector_store %arg4[%c2, %c0_29, %c0_30], %38 {strides = array<i32>} : memref<3x8x128xf32, #tpu.memory_space<vmem>>, vector<1x8x128xf32>,
    } else {
    }
    return
  }
  func.func @transform_0(%arg0: i32, %arg1: i32) -> (i32, i32) {
    %c0_i32 = arith.constant 0 : i32
    return %arg0, %arg1 : i32, i32
  }
  func.func @transform_1(%arg0: i32, %arg1: i32) -> (i32, i32) {
    %c0_i32 = arith.constant 0 : i32
    return %arg0, %arg1 : i32, i32
  }
  func.func @transform_2(%arg0: i32, %arg1: i32) -> (i32, i32, i32) {
    %c0_i32 = arith.constant 0 : i32
    %c0_i32_0 = arith.constant 0 : i32
    %c0_i32_1 = arith.constant 0 : i32
    return %c0_i32, %arg0, %c0_i32_0 : i32, i32, i32
  }
}

</mosaic_0001>

<bundles_post_ra>
// kernel: tpu_custom_call.1
= control target key start
LH: loop header
LB: loop body
LE: loop exit
PB: predicated region body
PF: predicated region fallthrough
CT: control target
= control target key end

     0   :  { %7 = vsyncpa [#allocation6], 0  ;;  %s223_s0 = inlined_call_operand.hbm [shape: f32[8,256], index: 0, kind: input, shape index: {}]   ;;  %s224_s1 = inlined_call_operand.hbm [shape: f32[8,256], index: 1, kind: input, shape index: {}]   ;;  %s225_s2 = inlined_call_operand.hbm [shape: f32[3,8,128], index: 2, kind: output, shape index: {}]  }
   0x1   :  { %8 = vsyncpa [#allocation9], 0 }
   0x2   :  { %9 = vsyncpa [#allocation7], 0  ;;  %s167_s9 = smov [#allocation5]   ;;  %s168_s11 = smov [#allocation8]  }
   0x3   :  { %s16_s10 = sshll.u32 %s167_s9, 4  ;;  %s26_s12 = sshll.u32 %s168_s11, 4  ;;  %s17_s10 = int_to_ptr.vmem [resolvable:$true] %s16_s10  ;;  %s27_s12 = int_to_ptr.vmem [resolvable:$true] %s26_s12 }
   0x4   :  { %s95_s15 = scalar_lea.hbm %s223_s0, 256 }
   0x5   :  { %p96_p0 = scmp.ne.s32.totalorder %s223_s0, %s95_s15  ;;  %p99_p1 = scmp.lt.u32.totalorder %s95_s15, %s223_s0 }
   0x7   :  { %p101_p2 = pnand %p99_p1, %p96_p0 }
   0x9   :  { %104 = shalt.err (!%p101_p2)
}
   0xa   :  { %s105_s20 = scalar_lea.vmem %s17_s10, 256  ;;  %p110_p4 = scmp.lt.s32.totalorder %s17_s10, %s17_s10 }
   0xb   :  { %p106_p3 = scmp.ne.s32.totalorder %s17_s10, %s105_s20  ;;  %p111_p5 = scmp.lt.s32.totalorder %s105_s20, %s105_s20 }
   0xd   :  { %p112_p6 = por %p111_p5, %p110_p4 }
   0xf   :  { %p113_p7 = pnand %p112_p6, %p106_p3 }
  0x11   :  { %116 = shalt.err (!%p113_p7)
}
  0x12   :  { %19 = dma.hbm_to_vmem [thread:$0]  %s223_s0, 256, %s17_s10, [#allocation6]  }
  0x13   :  { %s117_s25 = scalar_lea.hbm %s224_s1, 256 }
  0x14   :  { %p118_p8 = scmp.ne.s32.totalorder %s224_s1, %s117_s25  ;;  %p121_p9 = scmp.lt.u32.totalorder %s117_s25, %s224_s1 }
  0x16   :  { %p123_p10 = pnand %p121_p9, %p118_p8 }
  0x18   :  { %126 = shalt.err (!%p123_p10)
}
  0x19   :  { %s127_s30 = scalar_lea.vmem %s27_s12, 256  ;;  %p132_p12 = scmp.lt.s32.totalorder %s27_s12, %s27_s12 }
  0x1a   :  { %p128_p11 = scmp.ne.s32.totalorder %s27_s12, %s127_s30  ;;  %p133_p13 = scmp.lt.s32.totalorder %s127_s30, %s127_s30 }
  0x1c   :  { %p134_p0 = por %p133_p13, %p132_p12 }
  0x1e   :  { %p135_p1 = pnand %p134_p0, %p128_p11 }
  0x20   :  { %138 = shalt.err (!%p135_p1)
}
  0x21   :  { %29 = dma.hbm_to_vmem [thread:$0]  %s224_s1, 256, %s27_s12, [#allocation9]  }
  0x22   :  { %161 = dma.done.wait [#allocation6], 256  }
  0x23   :  { %162 = vsyncadd [#allocation6], 4294967040 }
  0x24   :  { %163 = dma.done.wait [#allocation9], 256  }
  0x25   :  { %164 = vsyncadd [#allocation9], 4294967040  ;;  %v43_v0 = vld [vmem:[#allocation5] sm:$0xff]  ;;  %v44_v1 = vld [vmem:[#allocation5 + $0x8] sm:$0xff]  ;;  %s169_s4 = smov [#allocation10]  }
  0x26   :  { %v45_v2 = vld [vmem:[#allocation8] sm:$0xff]  ;;  %v46_v3 = vld [vmem:[#allocation8 + $0x8] sm:$0xff]  ;;  %v54_v5 = vadd.f32 %v44_v1, %v43_v0  ;;  %s77_s5 = sshll.u32 %s169_s4, 4  ;;  %s78_s5 = int_to_ptr.vmem [resolvable:$true] %s77_s5 }
  0x27   :  { %v48_v4 = vmul.f32 %v45_v2, %v43_v0  ;;  %v49_v6 = vmul.f32 %v46_v3, %v44_v1  ;;  %v58_v7 = vadd.f32 %v46_v3, %v45_v2  ;;  %s139_s1 = scalar_lea.vmem %s78_s5, 384  ;;  %p144_p3 = scmp.lt.s32.totalorder %s78_s5, %s78_s5 }
  0x28   :  { %68 = vst [vmem:[#allocation10 + $0x8] sm:$0xff] %v54_v5  ;;  %p140_p2 = scmp.ne.s32.totalorder %s78_s5, %s139_s1  ;;  %p145_p4 = scmp.lt.s32.totalorder %s139_s1, %s139_s1 }
  0x29   :  { %v50_v8 = vadd.f32 %v49_v6, %v48_v4  ;;  %71 = vst [vmem:[#allocation10 + $0x10] sm:$0xff] %v58_v7 }
  0x2a   :  { %p146_p5 = por %p145_p4, %p144_p3 }
  0x2b   :  { %65 = vst [vmem:[#allocation10] sm:$0xff] %v50_v8 }
  0x2c   :  { %p147_p6 = pnand %p146_p5, %p140_p2 }
  0x2e   :  { %150 = shalt.err (!%p147_p6)
}
  0x2f   :  { %s151_s8 = scalar_lea.hbm %s225_s2, 384 }
  0x30   :  { %p152_p7 = scmp.ne.s32.totalorder %s225_s2, %s151_s8  ;;  %p155_p8 = scmp.lt.u32.totalorder %s151_s8, %s225_s2 }
  0x32   :  { %p157_p9 = pnand %p155_p8, %p152_p7 }
  0x34   :  { %160 = shalt.err (!%p157_p9)
}
  0x35   :  { %s170_s13 = smov 128   ;;  %s171_s14 = smov 8  }
  0x36   :  { %83 = dma.vmem_to_hbm [thread:$0]  %s78_s5, 384, %s225_s2, [#allocation7], %s170_s13, %s170_s13, %s171_s14  }
  0x37   :  { %165 = dma.done.wait [#allocation7], 384  }
  0x38   :  { %166 = vsyncadd [#allocation7], 4294966912 }
  0x39   :  { %87 = vsyncpa [#allocation6], 1 }
  0x3a   :  { %88 = vsyncpa [#allocation9], 1 }
  0x3b   :  { %89 = vsyncpa [#allocation7], 1 }

</bundles_post_ra>
